<compile_context>
chip_gen: v5e
topology: v5e:2x2
jax: 0.10.0
libtpu: 0.0.40
codegen_flags: <defaults>
</compile_context>

<pallas_src>
import math

import jax
import jax.numpy as jnp
import numpy as np
from jax import lax
from jax.experimental import pallas as pl
from jax.experimental.pallas import tpu as pltpu

INPUT_DIM = 2
_INV_SQRT2 = 1.0 / math.sqrt(2.0)
_SQRT2 = math.sqrt(2.0)


def _soc2_kernel(at_ref, x_ref, o_ref):
    """at_ref: (1,) f32 in SMEM (the angle_tan nn.Parameter).
    x_ref / o_ref: (TB, TG) f32 blocks in VMEM; pairs are interleaved along
    the lane (last) axis as (even lane, odd lane)."""
    angle_tan = at_ref[0] + 1.19
    inv_tan = 1.0 / angle_tan                      # scalar, hoisted
    inv_den = 1.0 / (angle_tan * angle_tan + 1.0)  # scalar, hoisted

    x = x_ref[...]
    tg = x.shape[-1]

    # Partner of lane d within its (even, odd) pair:
    #   even d -> x[d+1],  odd d -> x[d-1].
    # pltpu.roll follows jnp.roll semantics: roll(x, 1)[d] = x[d-1].
    nxt = pltpu.roll(x, tg - 1, 1)   # nxt[:, d] = x[:, d+1]  (wrap never used)
    prv = pltpu.roll(x, 1, 1)        # prv[:, d] = x[:, d-1]  (wrap never used)
    lane = lax.broadcasted_iota(jnp.int32, x.shape, 1)
    is_even = (lane & 1) == 0
    partner = jnp.where(is_even, nxt, prv)

    # Per-pair quantities, broadcast to both elements of the pair.
    s = _INV_SQRT2 * (x + partner)      # s = (x0 + x1) / sqrt(2)
    y = 0.5 * (x - partner)             # y = x - s/sqrt(2); partner's y = -y
    y_norm = _SQRT2 * jnp.abs(y)        # ||(y, -y)||_2 = sqrt(2) * |y|

    # NOTE: s * inv_tan assumes the same sign convention as s / angle_tan
    # (angle_tan > 0 for the +1.19 init, as in the reference module).
    mask1 = jnp.logical_and(s * inv_tan > -y_norm, s * angle_tan < y_norm)
    mask2 = y_norm <= s * angle_tan
    m1 = mask1.astype(x.dtype)
    m2 = mask2.astype(x.dtype)

    s1 = (s + y_norm * angle_tan) * inv_den
    coeff = s1 * angle_tan / (y_norm + 1e-9)

    x_result = s1 * _INV_SQRT2 + coeff * y
    o_ref[...] = m1 * x_result + m2 * x


def _round_up(a, m):
    return (a + m - 1) // m * m


def soc_2dim_forward(x, angle_tan_param, *, max_tb=256, max_tg=1024):
    """x: (B, D) float32;  angle_tan_param: (1,) float32 (the nn.Parameter)."""
    B, D = x.shape
    D_even = D + (D % INPUT_DIM)  # module appends one zero column when D is odd

    # Lane-dense tiling: TB multiple of 8, TG multiple of 128 (and even, so
    # cone pairs never straddle a block boundary).
    TB = min(max_tb, _round_up(B, 8))
    TG = min(max_tg, _round_up(D_even, 128))
    B_pad = _round_up(B, TB)
    D_pad = _round_up(D_even, TG)
    # A single zero-pad covers both the module's odd-D column and TPU alignment.
    x_pad = jnp.pad(x, ((0, B_pad - B), (0, D_pad - D)))

    out = pl.pallas_call(
        _soc2_kernel,
        out_shape=jax.ShapeDtypeStruct((B_pad, D_pad), x.dtype),
        grid=(B_pad // TB, D_pad // TG),
        in_specs=[
            pl.BlockSpec(memory_space=pltpu.MemorySpace.SMEM),  # angle_tan
            pl.BlockSpec((TB, TG), lambda i, j: (i, j)),        # x block
        ],
        out_specs=pl.BlockSpec((TB, TG), lambda i, j: (i, j)),
        compiler_params=pltpu.CompilerParams(
            dimension_semantics=("parallel", "parallel")),
    )(angle_tan_param, x_pad)

    return out[:B, :D]


def _reference_forward(x, angle_tan_param):
    """Pure-JAX transcription of the PyTorch soc_2dim.forward (verification)."""
    B, D = x.shape
    if D % INPUT_DIM == 1:
        xr = jnp.concatenate([x, jnp.zeros((B, 1), x.dtype)], axis=1)
    else:
        xr = x
    xr = xr.reshape(B, -1, INPUT_DIM)
    s = _INV_SQRT2 * jnp.sum(xr, axis=2)
    y = xr - s[..., None] * _INV_SQRT2
    angle_tan = angle_tan_param[0] + 1.19
    y_norm = jnp.sqrt(jnp.sum(y * y, axis=2))  # torch.linalg.norm(y, 2, dim=2)
    mask1 = jnp.logical_and(s / angle_tan > -y_norm, s * angle_tan < y_norm)
    mask2 = y_norm <= s * angle_tan
    s1 = (s + y_norm * angle_tan) / (angle_tan ** 2 + 1.0)
    coeff = s1 / (y_norm + 1e-9) * angle_tan
    y1 = coeff[..., None] * y
    x_result = s1[..., None] * _INV_SQRT2 + y1
    x_result2 = (mask1[..., None].astype(x.dtype) * x_result
                 + mask2[..., None].astype(x.dtype) * xr)
    flat = x_result2.reshape(B, -1)
    return flat[:, :D]


if __name__ == "__main__":
    key = jax.random.PRNGKey(0)
    B, D = 8, 33  # odd D exercises the module's zero-pad path
    x = jax.random.normal(key, (B, D), dtype=jnp.float32)

    # nn.Parameter(torch.tensor([0.0]))
    angle_tan_param = jnp.zeros((1,), dtype=jnp.float32)

    out = jax.block_until_ready(soc_2dim_forward(x, angle_tan_param))
    ref = _reference_forward(x, angle_tan_param)

    assert out.shape == (B, D)
    assert np.allclose(np.asarray(out), np.asarray(ref), atol=1e-4, rtol=1e-4)

    print("KERNEL_OK")
</pallas_src>

<mosaic_0001>
module attributes {stable_mosaic.version = 11 : i64} {
  func.func @_soc2_kernel(%arg0: i32, %arg1: i32, %arg2: memref<1xf32, #tpu.memory_space<smem>>, %arg3: memref<8x128xf32, #tpu.memory_space<vmem>>, %arg4: memref<8x128xf32, #tpu.memory_space<vmem>>) attributes {dimension_semantics = [#tpu.dimension_semantics<parallel>, #tpu.dimension_semantics<parallel>], iteration_bounds = array<i64: 1, 1>, scalar_prefetch = 0 : i64, scratch_operands = 0 : i64, tpu.core_type = #tpu.core_type<tc>, window_params = [{transform_indices = @transform_0, window_bounds = array<i64: 1>}, {transform_indices = @transform_1, window_bounds = array<i64: 8, 128>}, {transform_indices = @transform_2, window_bounds = array<i64: 8, 128>}]} {
    %c0 = arith.constant 0 : index
    %0 = memref.load %arg2[%c0] : memref<1xf32, #tpu.memory_space<smem>>
    %cst = arith.constant 1.190000e+00 : f32
    %1 = arith.addf %0, %cst : f32
    %cst_0 = arith.constant 1.000000e+00 : f32
    %2 = arith.divf %cst_0, %1 : f32
    %3 = arith.mulf %1, %1 : f32
    %cst_1 = arith.constant 1.000000e+00 : f32
    %4 = arith.addf %3, %cst_1 : f32
    %cst_2 = arith.constant 1.000000e+00 : f32
    %5 = arith.divf %cst_2, %4 : f32
    %c0_3 = arith.constant 0 : index
    %c0_4 = arith.constant 0 : index
    %6 = vector.load %arg3[%c0_3, %c0_4] : memref<8x128xf32, #tpu.memory_space<vmem>>, vector<8x128xf32>
    %c127_i32 = arith.constant 127 : i32
    %7 = tpu.dynamic_rotate %6 by %c127_i32 dim 1 : vector<8x128xf32>, i32 -> vector<8x128xf32>
    %c1_i32 = arith.constant 1 : i32
    %8 = tpu.dynamic_rotate %6 by %c1_i32 dim 1 : vector<8x128xf32>, i32 -> vector<8x128xf32>
    %9 = tpu.iota {dimensions = array<i32: 1>} : vector<8x128xi32>
    %c1_i32_5 = arith.constant 1 : i32
    %10 = vector.broadcast %c1_i32_5 : i32 to vector<8x128xi32>
    %11 = arith.andi %9, %10 : vector<8x128xi32>
    %c0_i32 = arith.constant 0 : i32
    %12 = vector.broadcast %c0_i32 : i32 to vector<8x128xi32>
    %13 = arith.cmpi eq, %11, %12 : vector<8x128xi32>
    %14 = arith.select %13, %7, %8 : vector<8x128xi1>, vector<8x128xf32>
    %15 = arith.addf %6, %14 : vector<8x128xf32>
    %cst_6 = arith.constant 0.707106769 : f32
    %16 = vector.broadcast %cst_6 : f32 to vector<8x128xf32>
    %17 = arith.mulf %16, %15 : vector<8x128xf32>
    %18 = arith.subf %6, %14 : vector<8x128xf32>
    %cst_7 = arith.constant 5.000000e-01 : f32
    %19 = vector.broadcast %cst_7 : f32 to vector<8x128xf32>
    %20 = arith.mulf %19, %18 : vector<8x128xf32>
    %21 = math.absf %20 : vector<8x128xf32>
    %cst_8 = arith.constant 1.41421354 : f32
    %22 = vector.broadcast %cst_8 : f32 to vector<8x128xf32>
    %23 = arith.mulf %22, %21 : vector<8x128xf32>
    %24 = vector.broadcast %2 : f32 to vector<8x128xf32>
    %25 = arith.mulf %17, %24 : vector<8x128xf32>
    %cst_9 = arith.constant 0.000000e+00 : f32
    %26 = vector.broadcast %cst_9 : f32 to vector<8x128xf32>
    %27 = arith.subf %26, %23 : vector<8x128xf32>
    %28 = arith.cmpf ogt, %25, %27 : vector<8x128xf32>
    %29 = vector.broadcast %1 : f32 to vector<8x128xf32>
    %30 = arith.mulf %17, %29 : vector<8x128xf32>
    %31 = arith.cmpf olt, %30, %23 : vector<8x128xf32>
    %32 = arith.andi %28, %31 : vector<8x128xi1>
    %33 = vector.broadcast %1 : f32 to vector<8x128xf32>
    %34 = arith.mulf %17, %33 : vector<8x128xf32>
    %35 = arith.cmpf ole, %23, %34 : vector<8x128xf32>
    %36 = arith.extui %32 : vector<8x128xi1> to vector<8x128xi32>
    %37 = arith.sitofp %36 : vector<8x128xi32> to vector<8x128xf32>
    %38 = arith.extui %35 : vector<8x128xi1> to vector<8x128xi32>
    %39 = arith.sitofp %38 : vector<8x128xi32> to vector<8x128xf32>
    %40 = vector.broadcast %1 : f32 to vector<8x128xf32>
    %41 = arith.mulf %23, %40 : vector<8x128xf32>
    %42 = arith.addf %17, %41 : vector<8x128xf32>
    %43 = vector.broadcast %5 : f32 to vector<8x128xf32>
    %44 = arith.mulf %42, %43 : vector<8x128xf32>
    %45 = vector.broadcast %1 : f32 to vector<8x128xf32>
    %46 = arith.mulf %44, %45 : vector<8x128xf32>
    %cst_10 = arith.constant 9.99999971E-10 : f32
    %47 = vector.broadcast %cst_10 : f32 to vector<8x128xf32>
    %48 = arith.addf %23, %47 : vector<8x128xf32>
    %49 = arith.divf %46, %48 : vector<8x128xf32>
    %cst_11 = arith.constant 0.707106769 : f32
    %50 = vector.broadcast %cst_11 : f32 to vector<8x128xf32>
    %51 = arith.mulf %44, %50 : vector<8x128xf32>
    %52 = arith.mulf %49, %20 : vector<8x128xf32>
    %53 = arith.addf %51, %52 : vector<8x128xf32>
    %54 = arith.mulf %37, %53 : vector<8x128xf32>
    %55 = arith.mulf %39, %6 : vector<8x128xf32>
    %56 = arith.addf %54, %55 : vector<8x128xf32>
    %c0_12 = arith.constant 0 : index
    %c0_13 = arith.constant 0 : index
    %57 = vector.load %arg4[%c0_12, %c0_13] : memref<8x128xf32, #tpu.memory_space<vmem>>, vector<8x128xf32>
    tpu.vector_store %arg4[%c0_12, %c0_13], %56 {strides = array<i32>} : memref<8x128xf32, #tpu.memory_space<vmem>>, vector<8x128xf32>,
    return
  }
  func.func @transform_0(%arg0: i32, %arg1: i32) -> i32 {
    %c0_i32 = arith.constant 0 : i32
    %c0_i32_0 = arith.constant 0 : i32
    return %c0_i32 : i32
  }
  func.func @transform_1(%arg0: i32, %arg1: i32) -> (i32, i32) {
    %c0_i32 = arith.constant 0 : i32
    return %arg0, %arg1 : i32, i32
  }
  func.func @transform_2(%arg0: i32, %arg1: i32) -> (i32, i32) {
    %c0_i32 = arith.constant 0 : i32
    return %arg0, %arg1 : i32, i32
  }
}

</mosaic_0001>

<bundles_post_ra>
// kernel: tpu_custom_call.1
= control target key start
LH: loop header
LB: loop body
LE: loop exit
PB: predicated region body
PF: predicated region fallthrough
CT: control target
= control target key end

     0   :  { %8 = vsyncpa [#allocation4], 0  ;;  %s252_s0 = inlined_call_operand.<no memory space> [shape: f32[1], index: 0, kind: input, shape index: {}]   ;;  %s253_s1 = inlined_call_operand.hbm [shape: f32[8,128], index: 1, kind: input, shape index: {}]   ;;  %s254_s2 = inlined_call_operand.hbm [shape: f32[8,128], index: 2, kind: output, shape index: {}]  }
   0x1   :  { %9 = vsyncpa [#allocation5], 0  ;;  %s17_s11 = sshll.u32 %s253_s1, 4  ;;  %s206_s12 = smov [#allocation3]   ;;  %s18_s11 = int_to_ptr.hbm [resolvable:$true] %s17_s11 }
   0x2   :  { %s19_s13 = sshll.u32 %s206_s12, 4  ;;  %s20_s13 = int_to_ptr.vmem [resolvable:$true] %s19_s13 }
   0x3   :  { %22 = dma.hbm_to_vmem [thread:$0]  %s18_s11, 128, %s20_s13, [#allocation4]  }
   0x4   :  { %202 = dma.done.wait [#allocation4], 128  }
   0x5   :  { %203 = vsyncadd [#allocation4], 4294967168  ;;  %s28_s16 = sadd.f32 1.19, %s252_s0  ;;  %v235_v1 = vld [vmem:[#allocation3] sm:$0xff]  ;;  %s207_s1 = smov 127   ;;  %v68_v23 = vlaneseq }
   0x6   :  { %64 = vrot.lane.b32.xlu0 %v235_v1, %s207_s1  ;;  %s208_s0 = smov 1   ;;  %v209_v58 = vmov 0.0   ;;  %s210_s21 = smov [#allocation6]  }
   0x7   :  { %v232_v0 = vstv %s28_s16  ;;  %s45_s17 = smul.f32 %s28_s16, %s28_s16  ;;  %v69_v24 = vand.u32 127, %v68_v23  ;;  %s125_s22 = sshll.u32 %s210_s21, 4  ;;  %s126_s22 = int_to_ptr.vmem [resolvable:$true] %s125_s22 }
   0x8   :  { %148 = vrcp.f32 %v232_v0  ;;  %v39_v5 = vand.u32 2147483647, %v232_v0  ;;  %v41_v6 = vand.u32 2147483648, %v232_v0  ;;  %vm35_vm0 = vweird.f32 %v232_v0  ;;  %s127_s25 = sshll.u32 %s254_s2, 4  ;;  %s128_s25 = int_to_ptr.hbm [resolvable:$true] %s127_s25 }
   0x9   :  { %s46_s18 = sadd.f32 1.0, %s45_s17  ;;  %v70_v26 = vand.u32 1, %v69_v24 }
   0xa   :  { %vm40_vm3 = vcmp.eq.f32.partialorder %v39_v5, 8.507059e+37  ;;  %v42_v11 = vor.u32 1.1754944e-38, %v41_v6 }
   0xb   :  { %v47_v2 = vstv %s46_s18  ;;  %vm71_vm8 = vcmp.eq.s32.totalorder %v70_v26, 0 }
   0xc   :  { %150 = vrcp.f32 %v47_v2  ;;  %vm53_vm4 = vweird.f32 %v47_v2  ;;  %v59_v12 = vand.u32 2147483648, %v47_v2  ;;  %v57_v15 = vand.u32 2147483647, %v47_v2 }
   0xe   :  { %v149_v3 = vpop.eup %148  ;;  %66 = vrot.lane.b32.xlu0 %v235_v1, %s208_s0  ;;  %v60_v19 = vor.u32 1.1754944e-38, %v59_v12  ;;  %vm58_vm7 = vcmp.eq.f32.partialorder %v57_v15, 8.507059e+37 }
   0xf   :  { %v31_v4 = vmul.f32 %v149_v3, %v232_v0  ;;  %vm36_vm1 = vweird.f32 %v149_v3 }
  0x10   :  { %vm37_vm2 = vmor %vm35_vm0, %vm36_vm1 }
  0x11   :  { %v32_v7 = vsub.f32 1.0, %v31_v4 }
  0x12   :  { %v151_v8 = vpop.eup %150 }
  0x13   :  { %v33_v9 = vmul.f32 %v149_v3, %v32_v7  ;;  %v49_v10 = vmul.f32 %v151_v8, %v47_v2  ;;  %vm54_vm5 = vweird.f32 %v151_v8 }
  0x14   :  { %vm55_vm6 = vmor %vm53_vm4, %vm54_vm5 }
  0x15   :  { %v34_v13 = vadd.f32 %v149_v3, %v33_v9  ;;  %v50_v14 = vsub.f32 1.0, %v49_v10 }
  0x17   :  { %v38_v16 = vsel %vm37_vm2, %v149_v3, %v34_v13  ;;  %v51_v17 = vmul.f32 %v151_v8, %v50_v14 }
  0x18   :  { %v43_v18 = vsel %vm40_vm3, %v42_v11, %v38_v16 }
  0x19   :  { %139 = vpush %v43_v18  ;;  %v52_v20 = vadd.f32 %v151_v8, %v51_v17 }
  0x1b   :  { %v56_v21 = vsel %vm55_vm6, %v151_v8, %v52_v20 }
  0x1c   :  { %v61_v22 = vsel %vm58_vm7, %v60_v19, %v56_v21 }
  0x1d   :  { %141 = vpush %v61_v22 }
  0x4a   :  { %s140_s19 = spop %139 }
  0x4b   :  { %v79_v42 = vstv %s140_s19 }
  0x4e   :  { %s142_s20 = spop %141 }
  0x4f   :  { %v94_v40 = vstv %s142_s20 }
  0x78   :  { %v65_v25 = vpop.permute.xlu0 %64 }
  0x80   :  { %v67_v27 = vpop.permute.xlu0 %66 }
  0x81   :  { %v72_v28 = vsel %vm71_vm8, %v65_v25, %v67_v27 }
  0x82   :  { %v75_v29 = vsub.f32 %v235_v1, %v72_v28  ;;  %v73_v34 = vadd.f32 %v72_v28, %v235_v1 }
  0x84   :  { %v76_v30 = vmul.f32 0.5, %v75_v29  ;;  %v74_v36 = vmul.f32 0.70710677, %v73_v34 }
  0x86   :  { %v77_v31 = vand.u32 2147483647, %v76_v30  ;;  %v80_v49 = vmul.f32 %v79_v42, %v74_v36  ;;  %v84_v51 = vmul.f32 %v74_v36, %v232_v0 }
  0x88   :  { %v78_v32 = vmul.f32 1.4142135, %v77_v31 }
  0x8a   :  { %v97_v33 = vadd.f32 1e-09, %v78_v32  ;;  %v92_v35 = vmul.f32 %v78_v32, %v232_v0  ;;  %v81_v47 = vsub.f32 0.0, %v78_v32  ;;  %vm87_vm14 = vcmp.le.f32.partialorder %v78_v32, %v84_v51 }
  0x8b   :  { %vm85_vm15 = vcmp.lt.f32.partialorder %v84_v51, %v78_v32  ;;  %v138_v59 = vsel %vm87_vm14, 1.0, %v209_v58 }
  0x8c   :  { %152 = vrcp.f32 %v97_v33  ;;  %v93_v38 = vadd.f32 %v92_v35, %v74_v36  ;;  %v109_v43 = vand.u32 2147483648, %v97_v33  ;;  %v107_v46 = vand.u32 2147483647, %v97_v33 }
  0x8d   :  { %vm103_vm10 = vweird.f32 %v97_v33  ;;  %vm82_vm13 = vcmp.gt.f32.partialorder %v80_v49, %v81_v47  ;;  %v117_v63 = vmul.f32 %v138_v59, %v235_v1 }
  0x8e   :  { %v95_v44 = vmul.f32 %v94_v40, %v93_v38  ;;  %v110_v50 = vor.u32 1.1754944e-38, %v109_v43  ;;  %vm108_vm12 = vcmp.eq.f32.partialorder %v107_v46, 8.507059e+37  ;;  %vm86_vm0 = vmand %vm82_vm13, %vm85_vm15 }
  0x8f   :  { %v137_v61 = vsel %vm86_vm0, 1.0, %v209_v58 }
  0x90   :  { %v96_v52 = vmul.f32 %v95_v44, %v232_v0  ;;  %v113_v56 = vmul.f32 0.70710677, %v95_v44 }
  0x92   :  { %v153_v37 = vpop.eup %152 }
  0x93   :  { %v99_v39 = vmul.f32 %v153_v37, %v97_v33  ;;  %vm104_vm9 = vweird.f32 %v153_v37 }
  0x94   :  { %vm105_vm11 = vmor %vm103_vm10, %vm104_vm9 }
  0x95   :  { %v100_v41 = vsub.f32 1.0, %v99_v39 }
  0x97   :  { %v101_v45 = vmul.f32 %v153_v37, %v100_v41 }
  0x99   :  { %v102_v48 = vadd.f32 %v153_v37, %v101_v45 }
  0x9b   :  { %v106_v53 = vsel %vm105_vm11, %v153_v37, %v102_v48 }
  0x9c   :  { %v111_v54 = vsel %vm108_vm12, %v110_v50, %v106_v53 }
  0x9d   :  { %v112_v55 = vmul.f32 %v111_v54, %v96_v52 }
  0x9f   :  { %v114_v57 = vmul.f32 %v112_v55, %v76_v30 }
  0xa1   :  { %v115_v60 = vadd.f32 %v114_v57, %v113_v56 }
  0xa3   :  { %v116_v62 = vmul.f32 %v137_v61, %v115_v60 }
  0xa5   :  { %v118_v0 = vadd.f32 %v117_v63, %v116_v62 }
  0xa7   :  { %119 = vst [vmem:[#allocation6] sm:$0xff] %v118_v0 }
  0xa8   :  { %130 = dma.vmem_to_hbm [thread:$0]  %s126_s22, 128, %s128_s25, [#allocation5]  }
  0xa9   :  { %204 = dma.done.wait [#allocation5], 128  }
  0xaa   :  { %205 = vsyncadd [#allocation5], 4294967168 }
  0xab   :  { %135 = vsyncpa [#allocation4], 1 }
  0xac   :  { %136 = vsyncpa [#allocation5], 1 }

</bundles_post_ra>
